<compile_context>
chip_gen: v7x
topology: tpu7x:2x2x1
jax: 0.10.0
libtpu: 0.0.40
codegen_flags: <defaults>
</compile_context>

<pallas_src>
import jax
import jax.numpy as jnp
from jax.experimental import pallas as pl
from jax.experimental.pallas import tpu as pltpu

REPEAT_H = 3
REPEAT_W = 3


def _repeat_hw_kernel(x_ref, o_ref, y_ref):
    """x_ref: (tnc, TH, W) resident across the repeat-H axis;
    o_ref: (tnc, TH, 3W) (repeat-H dim squeezed, placed by the output index_map);
    y_ref: VMEM scratch (tnc, TH, 3W) holding the W-repeat, built once per input tile."""
    @pl.when(pl.program_id(2) == 0)
    def _():
        x = x_ref[...]
        y_ref[...] = jnp.concatenate([x, x, x], axis=-1)

    o_ref[...] = y_ref[...]


def _round_up(v, m):
    return ((v + m - 1) // m) * m


def _vmem_limit_bytes():
    try:
        cap = int(pltpu.get_tpu_info().vmem_capacity_bytes)
    except Exception:
        cap = 64 * 1024 * 1024  # v7x worst case (per TensorCore)
    # Leave headroom for compiler-internal scratch; never request more than 96 MiB.
    return max(32 * 1024 * 1024, min(cap - 12 * 1024 * 1024, 96 * 1024 * 1024))


def repeat_three_times_hw(x, *, force_pallas=False):
    """(N, C, H, W) -> (N, C, 3H, 3W), identical to torch.Tensor.repeat(1, 1, 3, 3)."""
    N, C, H, W = x.shape
    NC = N * C
    itemsize = jnp.dtype(x.dtype).itemsize

    # Fast path: tiny inputs, or very narrow rows where every store would be a masked
    # vst.msk and every DMA chunk short -- XLA's fused broadcast wins there.
    tiny = NC * H * W * itemsize < 64 * 1024
    narrow = (W * itemsize < 512) and (H * W * itemsize < 16 * 1024)
    if not force_pallas and (tiny or narrow):
        return jnp.tile(x, (1, 1, REPEAT_H, REPEAT_W))

    # --- VMEM-aware tiling (padded (sublane, 128-lane) layout accounting) ------------
    # Resident pipeline footprint per step:
    #   2 x input block (double-buffered) + 2 x output block (double-buffered)
    # + 1 x scratch (W-repeat staging, persists across grid steps)
    sublane = 8 * max(1, 4 // itemsize)            # 8 f32 / 16 bf16 / 32 int8
    lanes_in = _round_up(W, 128)
    lanes_out = _round_up(REPEAT_W * W, 128)

    vmem_limit = _vmem_limit_bytes()
    budget = min((vmem_limit * 3) // 4, 40 * 1024 * 1024)

    def resident_bytes(tnc, th):
        th_p = _round_up(th, sublane)
        in_blk = tnc * th_p * lanes_in * itemsize
        out_blk = tnc * th_p * lanes_out * itemsize
        return 2 * in_blk + 3 * out_blk

    if resident_bytes(1, H) <= budget:
        # Whole (H, W) image per NC row; tile over the fused N*C axis.
        TH = H
        tnc = max(1, budget // resident_bytes(1, H))
        tnc = min(tnc, NC)
        # Keep >= 2 steps along the parallel NC axis so both v7x TensorCores get work.
        tnc = min(tnc, max(1, pl.cdiv(NC, 2)))
    else:
        # A single image exceeds the budget: tile H in sublane-aligned chunks.
        tnc = 1
        per_sub = resident_bytes(1, sublane)
        TH = max(sublane, (budget // per_sub) * sublane)
        if TH >= H:          # block dim must be a sublane multiple or equal the full dim
            TH = H

    grid = (pl.cdiv(NC, tnc), pl.cdiv(H, TH), REPEAT_H)

    x2 = x.reshape(NC, H, W)

    out2 = pl.pallas_call(
        _repeat_hw_kernel,
        out_shape=jax.ShapeDtypeStruct((NC, REPEAT_H, H, REPEAT_W * W), x.dtype),
        grid=grid,
        in_specs=[
            # Independent of the innermost repeat-H axis -> input tile stays resident;
            # the H-repeat is pure output-DMA placement (input read exactly once).
            pl.BlockSpec((tnc, TH, W), lambda nc, h, rh: (nc, h, 0)),
        ],
        out_specs=pl.BlockSpec(
            (tnc, None, TH, REPEAT_W * W), lambda nc, h, rh: (nc, rh, h, 0)
        ),
        scratch_shapes=[pltpu.VMEM((tnc, TH, REPEAT_W * W), x.dtype)],
        compiler_params=pltpu.CompilerParams(
            dimension_semantics=("parallel", "parallel", "arbitrary"),
            vmem_limit_bytes=vmem_limit,
        ),
        cost_estimate=pl.CostEstimate(
            flops=0,
            transcendentals=0,
            bytes_accessed=x.size * itemsize * (1 + REPEAT_H * REPEAT_W),
        ),
    )(x2)

    # (NC, 3, H, 3W) -> (N, C, 3H, 3W) is a free row-major reshape.
    return out2.reshape(N, C, REPEAT_H * H, REPEAT_W * W)


if __name__ == "__main__":
    key = jax.random.PRNGKey(0)

    # Small, grid-friendly shape exercising the Pallas path.
    x = jax.random.normal(key, (2, 4, 16, 16), dtype=jnp.float32)
    out = jax.block_until_ready(repeat_three_times_hw(x, force_pallas=True))
    ref = jnp.tile(x, (1, 1, REPEAT_H, REPEAT_W))
    assert out.shape == (2, 4, 48, 48), out.shape
    assert out.dtype == x.dtype
    assert bool(jnp.array_equal(out, ref)), "Pallas repeat mismatch vs reference"

    # Non-divisible NC (ragged last block via cdiv grid), W >= 128 -> Pallas path.
    x_odd = jax.random.normal(jax.random.PRNGKey(1), (1, 5, 136, 160), dtype=jnp.float32)
    out_odd = jax.block_until_ready(repeat_three_times_hw(x_odd))
    assert out_odd.shape == (1, 5, 408, 480)
    assert bool(jnp.array_equal(out_odd, jnp.tile(x_odd, (1, 1, REPEAT_H, REPEAT_W))))

    # Original module example size (1, 2, 3, 3): dispatched to the plain-XLA fast path.
    x_small = jax.random.normal(jax.random.PRNGKey(0), (1, 2, 3, 3), dtype=jnp.float32)
    out_small = jax.block_until_ready(repeat_three_times_hw(x_small))
    assert out_small.shape == (1, 2, 9, 9)
    assert bool(jnp.array_equal(out_small, jnp.tile(x_small, (1, 1, 3, 3))))

    print("KERNEL_OK")
</pallas_src>

<mosaic_0001>
module attributes {stable_mosaic.version = 11 : i64} {
  func.func @_repeat_hw_kernel(%arg0: i32, %arg1: i32, %arg2: i32, %arg3: memref<4x16x16xf32, #tpu.memory_space<vmem>>, %arg4: memref<4x1x16x48xf32, #tpu.memory_space<vmem>>, %arg5: memref<4x16x48xf32, #tpu.memory_space<vmem>>) attributes {dimension_semantics = [#tpu.dimension_semantics<parallel>, #tpu.dimension_semantics<parallel>, #tpu.dimension_semantics<arbitrary>], iteration_bounds = array<i64: 2, 1, 3>, scalar_prefetch = 0 : i64, scratch_operands = 1 : i64, tpu.core_type = #tpu.core_type<tc>, window_params = [{transform_indices = @transform_0, window_bounds = array<i64: 4, 16, 16>}, {transform_indices = @transform_1, window_bounds = array<i64: 4, 1, 16, 48>}]} {
    %c0_i32 = arith.constant 0 : i32
    %0 = arith.cmpi eq, %arg2, %c0_i32 : i32
    %1 = arith.extui %0 : i1 to i32
    %c0_i32_0 = arith.constant 0 : i32
    %2 = arith.cmpi ne, %1, %c0_i32_0 : i32
    scf.if %2 {
      %c0_7 = arith.constant 0 : index
      %c0_8 = arith.constant 0 : index
      %c0_9 = arith.constant 0 : index
      %7 = vector.load %arg3[%c0_7, %c0_8, %c0_9] : memref<4x16x16xf32, #tpu.memory_space<vmem>>, vector<4x16x16xf32>
      %8 = tpu.concatenate %7, %7, %7 in 2 : vector<4x16x16xf32>, vector<4x16x16xf32>, vector<4x16x16xf32> -> vector<4x16x48xf32>
      %c0_10 = arith.constant 0 : index
      %c0_11 = arith.constant 0 : index
      %c0_12 = arith.constant 0 : index
      %9 = vector.load %arg5[%c0_10, %c0_11, %c0_12] : memref<4x16x48xf32, #tpu.memory_space<vmem>>, vector<4x16x48xf32>
      tpu.vector_store %arg5[%c0_10, %c0_11, %c0_12], %8 {strides = array<i32>} : memref<4x16x48xf32, #tpu.memory_space<vmem>>, vector<4x16x48xf32>,
    } else {
    }
    %c0 = arith.constant 0 : index
    %c0_1 = arith.constant 0 : index
    %c0_2 = arith.constant 0 : index
    %3 = vector.load %arg5[%c0, %c0_1, %c0_2] : memref<4x16x48xf32, #tpu.memory_space<vmem>>, vector<4x16x48xf32>
    %c0_3 = arith.constant 0 : index
    %c0_4 = arith.constant 0 : index
    %c0_5 = arith.constant 0 : index
    %c0_6 = arith.constant 0 : index
    %4 = vector.load %arg4[%c0_3, %c0_4, %c0_5, %c0_6] : memref<4x1x16x48xf32, #tpu.memory_space<vmem>>, vector<4x1x16x48xf32>
    %5 = vector.shape_cast %4 : vector<4x1x16x48xf32> to vector<4x16x48xf32>
    %6 = vector.shape_cast %3 : vector<4x16x48xf32> to vector<4x1x16x48xf32>
    tpu.vector_store %arg4[%c0_3, %c0_4, %c0_5, %c0_6], %6 {strides = array<i32>} : memref<4x1x16x48xf32, #tpu.memory_space<vmem>>, vector<4x1x16x48xf32>,
    return
  }
  func.func @transform_0(%arg0: i32, %arg1: i32, %arg2: i32) -> (i32, i32, i32) {
    %c0_i32 = arith.constant 0 : i32
    %c0_i32_0 = arith.constant 0 : i32
    return %arg0, %arg1, %c0_i32 : i32, i32, i32
  }
  func.func @transform_1(%arg0: i32, %arg1: i32, %arg2: i32) -> (i32, i32, i32, i32) {
    %c0_i32 = arith.constant 0 : i32
    %c0_i32_0 = arith.constant 0 : i32
    return %arg0, %arg2, %arg1, %c0_i32 : i32, i32, i32, i32
  }
}

</mosaic_0001>

<bundles_post_ra>
// kernel: tpu_custom_call.1
= control target key start
LH: loop header
LB: loop body
LE: loop exit
PB: predicated region body
PF: predicated region fallthrough
CT: control target
= control target key end

     0   :  { %6 = vsyncpa [#allocation4], 0  ;;  %s959_s0 = inlined_call_operand.hbm [shape: f32[8,16,16], index: 0, kind: input, shape index: {}]   ;;  %s960_s1 = inlined_call_operand.hbm [shape: f32[8,3,16,48], index: 1, kind: output, shape index: {}]  }
   0x1   :  { %8 = vsyncpa [#allocation4 + $0x1], 0 }
   0x2   :  { %9 = vsyncpa [#allocation5], 0 }
   0x3   :  { %11 = vsyncpa [#allocation5 + $0x1], 0  ;;  %s711_s6 = smov 0   ;;  %s713_s7 = smov 0  }
   0x4   :  { %s715_s8 = smov 0   ;;  %s717_s9 = smov 0  }
   0x5   :  { %s719_s10 = smov 0   ;;  %s721_s11 = smov 0  }
   0x6   :  { %s723_s12 = smov 0   ;;  %s725_s13 = smov 0  }
   0x7   :  { %s727_s14 = smov 0   ;;  %s729_s15 = smov 0  }
   0x8   :  { %s731_s16 = smov 0  }
   0x9 LB: > { %s422_s17 = sadd.s32 4294967295, %s687_s16   ;;  %s423_s18 = sadd.s32 4294967294, %s687_s16   ;;  %s687_s16 = sphi %s731_s16, %s17_s16   ;;  %s683_s15 = sphi %s729_s15, %s979_s15   ;;  %s679_s14 = sphi %s727_s14, %s978_s14   ;;  %s675_s13 = sphi %s725_s13, %s977_s13   ;;  %s671_s12 = sphi %s723_s12, %s976_s12   ;;  %s667_s11 = sphi %s721_s11, %s975_s11   ;;  %s663_s10 = sphi %s719_s10, %s974_s10   ;;  %s659_s9 = sphi %s717_s9, %s973_s9   ;;  %s655_s8 = sphi %s715_s8, %s972_s8   ;;  %s651_s7 = sphi %s713_s7, %s971_s7   ;;  %s647_s6 = sphi %s711_s6, %s970_s6  }
   0xa   : > { %s29_s19 = sadd.s32 1, %s679_s14  ;;  %s36_s20 = sadd.s32 1, %s683_s15 }
   0xb   : > { %p30_p0 = scmp.ge.s32.totalorder %s29_s19, 3  ;;  %s45_s21 = sadd.s32 1, %s667_s11 }
   0xc   : > { %p52_p1 = scmp.ne.s32.totalorder %s667_s11, %s663_s10  ;;  %p53_p2 = scmp.eq.s32.totalorder %s687_s16, 0 }
   0xd   : > { %s981_s19 = smov (%p30_p0, %s29_s19), 0  ;;  %s983_s20 = smov (!%p30_p0, %s36_s20), %s683_s15 }
   0xe   : > { %p775_p3 = por %p53_p2, %p52_p1  ;;  %p58_p4 = scmp.ne.s32.totalorder %s663_s10, %s659_s9 }
   0xf   : > { %p38_p5 = scmp.ge.s32.totalorder %s983_s20, 2  ;;  %p59_p6 = scmp.eq.s32.totalorder %s422_s17, 0 }
  0x10   : > { %s69_s23 = ssub.s32 %s679_s14, %s981_s19  ;;  %s75_s24 = sadd.s32 1, %s655_s8 }
  0x11   : > { %s985_s20 = smov (%p38_p5, %s983_s20), 0  ;;  %p785_p7 = por %p59_p6, %p58_p4 }
  0x12   : > { %p85_p8 = scmp.ne.s32.totalorder %s655_s8, %s651_s7  ;;  %s40_s26 = ssub.s32 %s683_s15, %s985_s20 }
  0x13   : > { %p86_p9 = scmp.eq.s32.totalorder %s422_s17, 5  ;;  %p43_p10 = scmp.eq.s32.totalorder %s40_s26, 0 }
  0x14   : > { %s70_s27 = sor.u32 %s69_s23, %s40_s26  ;;  %p91_p13 = scmp.ne.s32.totalorder %s651_s7, %s647_s6 }
  0x15   : > { %p73_p11 = scmp.eq.s32.totalorder %s70_s27, 0  ;;  %p793_p12 = por %p86_p9, %p85_p8 }
  0x16   : > { %s798_s29 = scalar_select %p43_p10, %s667_s11, %s45_s21  }
  0x17   : > { %s964_s28 = scalar_select %p793_p12, 1, 0 }
  0x18   : > { %s801_s30 = scalar_select %p73_p11, %s655_s8, %s75_s24  }
  0x19   : > { %p92_p0 = scmp.eq.s32.totalorder %s423_s18, 5  ;;  %p462_p1 = scmp.lt.s32.totalorder %s687_s16, 6 }
  0x1a   : > { %s112_s3 = sand.u32 1, %s667_s11   ;;  %s442_s5 = sshll.u32 %s683_s15, 10 }
  0x1b   : > { %p806_p2 = por %p92_p0, %p91_p13  ;;  %s426_s4 = sshll.u32 %s112_s3, 6 }
  0x1c   : > { %s815_s23 = scalar_lea.hbm %s959_s0, %s442_s5  ;;  %s116_s21 = scalar_lea.vmem [#allocation3], %s426_s4 }
  0x1d   : > { %s965_s2 = scalar_select %p806_p2, 1, 0 }
  0x1e   : > { %s126_s24 = sshll.u32 %s116_s21, 4  ;;  %p821_p4 = pnand %p462_p1, %p775_p3  ;;  %s817_s24 = int_to_ptr.vmem [resolvable:$true] %s126_s24 }
  0x1f   : > { %s826_s26 = scalar_lea.sflag [#allocation4], %s112_s3  ;;  %s563_s27 = scalar_lea.hbm %s815_s23, 1024 }
  0x20   : > { %p564_p6 = scmp.ne.s32.totalorder %s815_s23, %s563_s27  ;;  %p565_p8 = pneg %p821_p4 }
  0x21   : > { %s568_s22 = scalar_lea.hbm %s959_s0, 2048  ;;  %p569_p3 = scmp.lt.u32.totalorder %s815_s23, %s959_s0 }
  0x22   : > { %p566_p9 = pnand %p565_p8, %p564_p6  ;;  %p570_p11 = scmp.lt.u32.totalorder %s568_s22, %s563_s27 }
  0x23   : > { %p572_p0 = scmp.lt.u32.totalorder %s563_s27, %s815_s23 }
  0x24   : > { %p567_p10 = pneg %p566_p9  ;;  %p571_p13 = por %p570_p11, %p569_p3 }
  0x26   : > { %p573_p1 = por %p572_p0, %p571_p13 }
  0x28   : > { %p574_p5 = pnand %p573_p1, %p567_p10 }
  0x2a   : > { %577 = shalt.err (!%p574_p5)
}
  0x2b   : > { %s578_s3 = scalar_lea.vmem %s817_s24, 1024  ;;  %s689_s21 = smov [#allocation3]  }
  0x2c   : > { %p579_p6 = scmp.ne.s32.totalorder %s817_s24, %s578_s3  ;;  %s583_s4 = sshll.u32 %s689_s21, 4  ;;  %s584_s4 = int_to_ptr.vmem [resolvable:$false] %s583_s4 }
  0x2d   : > { %s585_s5 = scalar_lea.vmem %s584_s4, 2048  ;;  %p586_p12 = scmp.lt.s32.totalorder %s817_s24, %s584_s4 }
  0x2e   : > { %p581_p9 = pnand %p579_p6, %p565_p8  ;;  %p587_p3 = scmp.lt.s32.totalorder %s585_s5, %s578_s3 }
  0x30   : > { %p582_p2 = pneg %p581_p9  ;;  %p588_p11 = por %p587_p3, %p586_p12 }
  0x32   : > { %p589_p13 = pnand %p588_p11, %p582_p2 }
  0x34   : > { %592 = shalt.err (!%p589_p13)
}
  0x35   : > { %s690_s27 = smov 128   ;;  %s691_s22 = smov 8  }
  0x36   : > { %457 = dma.hbm_to_vmem [thread:$0]  (!%p821_p4), %s815_s23, 1024, %s817_s24, %s826_s26, %s690_s27, %s690_s27, %s691_s22  }
  0x37   : > { %p134_p5 = scmp.lt.s32.totalorder %s687_s16, 7  ;;  %p967_p8 = scmp.ge.s32.totalorder %s687_s16, 1 }
  0x39   : > { %p135_p10 = pnand %p967_p8, %p134_p5 }
  0x3a   : > { %s140_s9 = sand.u32 (!%p135_p10), 1, %s663_s10  }
  0x3b   : > { %138 = sbr.rel (%p135_p10) target bundleno = 233 (0xe9), region = 24  ;;  %s431_s17 = sshll.u32 (!%p135_p10), %s140_s9, 6 }
  0x3c   : > { %s141_s3 = scalar_lea.sflag (!%p135_p10), [#allocation4], %s140_s9  ;;  %s144_s21 = scalar_lea.vmem (!%p135_p10), [#allocation3], %s431_s17 }
  0x42   : > { %638 = dma.done.wait (%p785_p7), %s141_s3, 1024  }
  0x43   : > { %640 = vsyncadd (%p785_p7), %s141_s3, 4294966272  ;;  %s160_s4 = sand.u32 1, %s651_s7   ;;  %p433_p12 = scmp.ne.s32.totalorder %s671_s12, 0 }
  0x44   : > { %s432_s23 = sshll.u32 %s160_s4, 6  ;;  %v173_v0 = vld [vmem:[%s144_s21 + $0x10] sm:$0xff] (!%p433_p12)  ;;  %v171_v1 = vld [vmem:[%s144_s21] sm:$0xff] (!%p433_p12)  ;;  %s692_s18 = smov (!%p433_p12), 16   ;;  %v174_v2 = vld [vmem:[%s144_s21 + $0x18] sm:$0xff] (!%p433_p12)  ;;  %vm235_vm0 = vcmask (!%p433_p12), 130048  }
  0x45   : > { %s865_s24 = scalar_lea.vmem [#allocation6], %s432_s23  ;;  %170 = sbr.rel (%p433_p12) target bundleno = 214 (0xd6), region = 32  ;;  %191 = vrot.lane.b32.xlu1 (!%p433_p12), %v173_v0, %s692_s18  ;;  %187 = vrot.lane.b32.xlu0 (!%p433_p12), %v171_v1, %s692_s18  ;;  %v172_v3 = vld [vmem:[%s144_s21 + $0x8] sm:$0xff] (!%p433_p12)  ;;  %v175_v5 = vld [vmem:[%s144_s21 + $0x20] sm:$0xff] (!%p433_p12)  ;;  %vm244_vm1 = vcmask (!%p433_p12), 261120   ;;  %vm253_vm2 = vcmask (!%p433_p12), 392192  }
  0x46   : > { %v176_v4 = vld [vmem:[%s144_s21 + $0x28] sm:$0xff] (!%p433_p12)  ;;  %v178_v6 = vld [vmem:[%s144_s21 + $0x38] sm:$0xff] (!%p433_p12)  ;;  %v177_v7 = vld [vmem:[%s144_s21 + $0x30] sm:$0xff] (!%p433_p12)  ;;  %s693_s25 = smov (!%p433_p12), 32  }
  0x49   : > { %193 = vrot.lane.b32.xlu1 (!%p433_p12), %v174_v2, %s692_s18  ;;  %189 = vrot.lane.b32.xlu0 (!%p433_p12), %v172_v3, %s692_s18 }
  0x4d   : > { %197 = vrot.lane.b32.xlu1 %v176_v4, %s692_s18  ;;  %195 = vrot.lane.b32.xlu0 %v175_v5, %s692_s18 }
  0x51   : > { %201 = vrot.lane.b32.xlu1 %v178_v6, %s692_s18  ;;  %199 = vrot.lane.b32.xlu0 %v177_v7, %s692_s18 }
  0x55   : > { %213 = vrot.lane.b32.xlu1 %v172_v3, %s693_s25  ;;  %211 = vrot.lane.b32.xlu0 %v171_v1, %s693_s25 }
  0x59   : > { %217 = vrot.lane.b32.xlu1 %v174_v2, %s693_s25  ;;  %215 = vrot.lane.b32.xlu0 %v173_v0, %s693_s25 }
  0x5d   : > { %221 = vrot.lane.b32.xlu1 %v176_v4, %s693_s25  ;;  %219 = vrot.lane.b32.xlu0 %v175_v5, %s693_s25 }
  0x61   : > { %225 = vrot.lane.b32.xlu1 %v178_v6, %s693_s25  ;;  %223 = vrot.lane.b32.xlu0 %v177_v7, %s693_s25 }
  0xb7   : > { %v192_v8 = vpop.permute.xlu1 %191  ;;  %v188_v9 = vpop.permute.xlu0 %187 }
  0xb8   : > { %v236_v16 = vsel %vm235_vm0, %v171_v1, %v188_v9  ;;  %v238_v22 = vsel %vm235_vm0, %v173_v0, %v192_v8 }
  0xbb   : > { %v194_v10 = vpop.permute.xlu1 %193  ;;  %v190_v11 = vpop.permute.xlu0 %189 }
  0xbc   : > { %v237_v17 = vsel %vm235_vm0, %v172_v3, %v190_v11  ;;  %v239_v23 = vsel %vm235_vm0, %v174_v2, %v194_v10 }
  0xbf   : > { %v198_v12 = vpop.permute.xlu1 %197  ;;  %v196_v13 = vpop.permute.xlu0 %195 }
  0xc0   : > { %v241_v28 = vsel %vm235_vm0, %v176_v4, %v198_v12  ;;  %v240_v29 = vsel %vm235_vm0, %v175_v5, %v196_v13 }
  0xc3   : > { %v202_v14 = vpop.permute.xlu1 %201  ;;  %v200_v15 = vpop.permute.xlu0 %199 }
  0xc4   : > { %v243_v34 = vsel %vm235_vm0, %v178_v6, %v202_v14  ;;  %v242_v35 = vsel %vm235_vm0, %v177_v7, %v200_v15 }
  0xc7   : > { %v214_v18 = vpop.permute.xlu1 %213  ;;  %v212_v19 = vpop.permute.xlu0 %211 }
  0xc8   : > { %v246_v20 = vsel %vm244_vm1, %v237_v17, %v214_v18  ;;  %v245_v21 = vsel %vm244_vm1, %v236_v16, %v212_v19 }
  0xc9   : > { %255 = vst.msk [vmem:[#allocation2 + $0x8] sm:$0xff] %vm253_vm2, %v246_v20  ;;  %254 = vst.msk [vmem:[#allocation2] sm:$0xff] %vm253_vm2, %v245_v21 }
  0xcb   : > { %v218_v24 = vpop.permute.xlu1 %217  ;;  %v216_v25 = vpop.permute.xlu0 %215 }
  0xcc   : > { %v248_v26 = vsel %vm244_vm1, %v239_v23, %v218_v24  ;;  %v247_v27 = vsel %vm244_vm1, %v238_v22, %v216_v25 }
  0xcd   : > { %257 = vst.msk [vmem:[#allocation2 + $0x18] sm:$0xff] %vm253_vm2, %v248_v26  ;;  %256 = vst.msk [vmem:[#allocation2 + $0x10] sm:$0xff] %vm253_vm2, %v247_v27 }
  0xcf   : > { %v222_v30 = vpop.permute.xlu1 %221  ;;  %v220_v31 = vpop.permute.xlu0 %219 }
  0xd0   : > { %v250_v32 = vsel %vm244_vm1, %v241_v28, %v222_v30  ;;  %v249_v33 = vsel %vm244_vm1, %v240_v29, %v220_v31 }
  0xd1   : > { %259 = vst.msk [vmem:[#allocation2 + $0x28] sm:$0xff] %vm253_vm2, %v250_v32  ;;  %258 = vst.msk [vmem:[#allocation2 + $0x20] sm:$0xff] %vm253_vm2, %v249_v33 }
  0xd3   : > { %v226_v36 = vpop.permute.xlu1 %225  ;;  %v224_v37 = vpop.permute.xlu0 %223 }
  0xd4   : > { %v252_v38 = vsel %vm244_vm1, %v243_v34, %v226_v36  ;;  %v251_v39 = vsel %vm244_vm1, %v242_v35, %v224_v37 }
  0xd5   : > { %261 = vst.msk [vmem:[#allocation2 + $0x38] sm:$0xff] %vm253_vm2, %v252_v38  ;;  %260 = vst.msk [vmem:[#allocation2 + $0x30] sm:$0xff] %vm253_vm2, %v251_v39 }
  0xd6 PF: > { %v262_v40 = vld [vmem:[#allocation2] sm:$0xff]  ;;  %vm270_vm3 = vcmask 392192   ;;  %v263_v41 = vld [vmem:[#allocation2 + $0x8] sm:$0xff]  ;;  %v264_v42 = vld [vmem:[#allocation2 + $0x10] sm:$0xff]  ;;  %s280_s26 = scalar_lea.sflag [#allocation5], %s160_s4 }
  0xd7   : > { %271 = vst.msk [vmem:[%s865_s24] sm:$0xff] %vm270_vm3, %v262_v40  ;;  %272 = vst.msk [vmem:[%s865_s24 + $0x8] sm:$0xff] %vm270_vm3, %v263_v41  ;;  %v265_v43 = vld [vmem:[#allocation2 + $0x18] sm:$0xff] }
  0xd8   : > { %273 = vst.msk [vmem:[%s865_s24 + $0x10] sm:$0xff] %vm270_vm3, %v264_v42  ;;  %v266_v44 = vld [vmem:[#allocation2 + $0x20] sm:$0xff]  ;;  %v267_v45 = vld [vmem:[#allocation2 + $0x28] sm:$0xff]  ;;  %274 = vst.msk [vmem:[%s865_s24 + $0x18] sm:$0xff] %vm270_vm3, %v265_v43 }
  0xd9   : > { %275 = vst.msk [vmem:[%s865_s24 + $0x20] sm:$0xff] %vm270_vm3, %v266_v44  ;;  %276 = vst.msk [vmem:[%s865_s24 + $0x28] sm:$0xff] %vm270_vm3, %v267_v45 }
  0xdc   : > { %v268_v46 = vld [vmem:[#allocation2 + $0x30] sm:$0xff]  ;;  %v269_v47 = vld [vmem:[#allocation2 + $0x38] sm:$0xff] }
  0xdd   : > { %277 = vst.msk [vmem:[%s865_s24 + $0x30] sm:$0xff] %vm270_vm3, %v268_v46  ;;  %278 = vst.msk [vmem:[%s865_s24 + $0x38] sm:$0xff] %vm270_vm3, %v269_v47 }
  0xde   : > { %s436_s5 = sshll.u32 %s671_s12, 1  ;;  %s443_s27 = smul.u32 24, %s675_s13 }
  0xdf   : > { %s314_s22 = sshll.u32 %s865_s24, 4  ;;  %s694_s3 = smov 256   ;;  %s315_s22 = int_to_ptr.vmem [resolvable:$true] %s314_s22 }
  0xe0   : > { %s295_s9 = sadd.s32 %s443_s27, %s436_s5  ;;  %p968_p7 = scmp.ne.s32.totalorder %s964_s28, 0 }
  0xe1   : > { %s438_s17 = sshll.u32 %s295_s9, 7  ;;  %s695_s18 = smov 768  }
  0xe2   : > { %446 = sst [smem:[#allocation8]] (%p968_p7), %s694_s3  ;;  %s297_s23 = scalar_lea.hbm %s960_s1, %s438_s17 }
  0xe3   : > { %447 = sst [smem:[#allocation8 + $0x1]] (%p968_p7), %s695_s18  ;;  %s696_s25 = smov 2  }
  0xe4   : > { %448 = sst [smem:[#allocation8 + $0x2]] (%p968_p7), %s696_s25  ;;  %s697_s12 = smov 128  }
  0xe5   : > { %449 = sst [smem:[#allocation8 + $0x3]] (%p968_p7), %s697_s12  ;;  %s698_s13 = smov 8  }
  0xe6   : > { %450 = sst [smem:[#allocation8 + $0x4]] (%p968_p7), %s697_s12  ;;  %s699_s24 = smov [#allocation7]  }
  0xe7   : > { %451 = sst [smem:[#allocation8 + $0x5]] (%p968_p7), %s698_s13  ;;  %s700_s5 = smov 0  }
  0xe8   : > { %452 = dma.general (%p968_p7), %s315_s22, 1024, %s297_s23, %s280_s26, %s699_s24, [#allocation8], %s700_s5, 0  }
  0xe9 PF: > { %p463_p2 = scmp.ge.s32.totalorder %s687_s16, 2  ;;  %s342_s27 = sand.u32 1, %s647_s6  }
  0xea   : > { %p969_p4 = scmp.ne.s32.totalorder %s965_s2, 0  ;;  %s343_s9 = scalar_lea.sflag [#allocation5], %s342_s27 }
  0xec   : > { %p459_p0 = pnand %p463_p2, %p969_p4 }
  0xee   : > { %642 = dma.done.wait (!%p459_p0), %s343_s9, 1024  }
  0xef   : > { %644 = vsyncadd (!%p459_p0), %s343_s9, 4294966272  ;;  %s17_s16 = sadd.s32 1, %s687_s16   ;;  %s970_s6 = smov %s651_s7 }
  0xf0   : > { %p14_p1 = scmp.ge.s32.totalorder %s17_s16, 8   ;;  %s971_s7 = smov %s655_s8 }
  0xf1   : > { %s972_s8 = smov %s801_s30  ;;  %s973_s9 = smov %s663_s10 }
  0xf2   : > { %s974_s10 = smov %s667_s11  ;;  %s975_s11 = smov %s798_s29 }
  0xf3   : > { %s976_s12 = smov %s679_s14  ;;  %s977_s13 = smov %s683_s15 }
  0xf4   : > { %s978_s14 = smov %s981_s19  ;;  %s979_s15 = smov %s985_s20 }
  0xf5   :  { %16 = sbr.rel (!%p14_p1) target bundleno = 9 (0x9), region = 78 }
  0xfc   :  { %348 = vsyncpa [#allocation4], 1 }
  0xfd   :  { %350 = vsyncpa [#allocation4 + $0x1], 1 }
  0xfe   :  { %351 = vsyncpa [#allocation5], 1 }
  0xff   :  { %353 = vsyncpa [#allocation5 + $0x1], 1 }

</bundles_post_ra>
